<compile_context>
chip_gen: v7x
topology: tpu7x:2x2x1
jax: 0.10.0
libtpu: 0.0.40
codegen_flags: <defaults>
</compile_context>

<pallas_src>
import jax
import jax.numpy as jnp
from jax.experimental import pallas as pl
from jax.experimental.pallas import tpu as pltpu


def _round_up(x, m):
    return ((x + m - 1) // m) * m


def linear_kernel(x_ref, w_ref, b_ref, o_ref):
    # x_ref: (TM, K)       streamed flattened-input tile
    # w_ref: (K, N_pad)    resident weight (pre-transposed, N padded to 128)
    # b_ref: (1, N_pad)    resident bias (padded)
    # o_ref: (TM, N_pad)   output tile
    acc = jnp.dot(x_ref[...], w_ref[...], preferred_element_type=jnp.float32)
    o_ref[...] = (acc + b_ref[...]).astype(o_ref.dtype)


@jax.jit
def linear_model_forward(x, weight, bias):
    """Forward pass of LinearModel.

    x:      (B, ...) float32 — flattened per example, like torch .view(B, -1)
    weight: (out_features, in_features) float32 (PyTorch convention)
    bias:   (out_features,) float32
    returns (B, out_features) float32
    """
    B = x.shape[0]
    x2d = x.reshape(B, -1)                      # torch .view(B, -1)
    K = x2d.shape[1]
    N = weight.shape[0]

    # Lane-dense padding of the output dimension (10 -> 128).
    N_pad = _round_up(max(N, 128), 128)

    # Batch tiling: TM multiple of 8 (sublane), capped at 1024 (fits the v5e
    # 16 MiB scoped-VMEM default with double-buffered x/out + resident W).
    TM = min(_round_up(B, 8), 1024)
    grid = (pl.cdiv(B, TM),)

    # Tiny one-time weight/bias prep (padded + transposed once in the wrapper
    # so the kernel body has no per-step transpose of the resident W tile).
    w_p = jnp.pad(weight, ((0, N_pad - N), (0, 0))).T      # (K, N_pad)
    b_p = jnp.pad(bias, ((0, N_pad - N),)).reshape(1, N_pad)

    cost = pl.CostEstimate(
        flops=2 * B * K * N_pad,
        transcendentals=0,
        bytes_accessed=(B * K + K * N_pad + N_pad + B * N_pad) * 4,
    )

    out = pl.pallas_call(
        linear_kernel,
        out_shape=jax.ShapeDtypeStruct((B, N_pad), jnp.float32),
        grid_spec=pltpu.PrefetchScalarGridSpec(
            num_scalar_prefetch=0,
            grid=grid,
            in_specs=[
                pl.BlockSpec((TM, K), lambda i: (i, 0)),       # streamed x
                pl.BlockSpec((K, N_pad), lambda i: (0, 0)),    # resident W
                pl.BlockSpec((1, N_pad), lambda i: (0, 0)),    # resident bias
            ],
            out_specs=pl.BlockSpec((TM, N_pad), lambda i: (i, 0)),
        ),
        compiler_params=pltpu.CompilerParams(
            dimension_semantics=("parallel",)),
        cost_estimate=cost,
    )(x2d, w_p, b_p)

    return out[:, :N]


def init_linear_params(key, in_features, out_features):
    # Deterministic init mimicking nn.Linear's uniform(-1/sqrt(in), 1/sqrt(in)).
    kw, kb = jax.random.split(key)
    bound = 1.0 / (in_features ** 0.5)
    weight = jax.random.uniform(
        kw, (out_features, in_features), jnp.float32, -bound, bound)
    bias = jax.random.uniform(
        kb, (out_features,), jnp.float32, -bound, bound)
    return weight, bias


if __name__ == "__main__":
    key = jax.random.PRNGKey(0)
    k_x, k_p = jax.random.split(key)

    B, C, H, W = 2, 1, 28, 28           # MNIST-style input
    in_features = C * H * W             # 784
    out_features = 10

    x = jax.random.normal(k_x, (B, C, H, W), jnp.float32)
    weight, bias = init_linear_params(k_p, in_features, out_features)

    y = linear_model_forward(x, weight, bias)
    y = jax.block_until_ready(y)

    # Sanity check against plain-JAX reference.
    y_ref = x.reshape(B, -1) @ weight.T + bias
    assert y.shape == (B, out_features)
    assert jnp.allclose(y, y_ref, atol=1e-5, rtol=1e-5)

    print("KERNEL_OK")
</pallas_src>

<mosaic_0001>
module attributes {stable_mosaic.version = 11 : i64} {
  func.func @linear_kernel(%arg0: i32, %arg1: memref<8x784xf32, #tpu.memory_space<vmem>>, %arg2: memref<784x128xf32, #tpu.memory_space<vmem>>, %arg3: memref<1x128xf32, #tpu.memory_space<vmem>>, %arg4: memref<8x128xf32, #tpu.memory_space<vmem>>) attributes {dimension_semantics = [#tpu.dimension_semantics<parallel>], iteration_bounds = array<i64: 1>, scalar_prefetch = 0 : i64, scratch_operands = 0 : i64, tpu.core_type = #tpu.core_type<tc>, window_params = [{transform_indices = @transform_0, window_bounds = array<i64: 8, 784>}, {pipeline_mode = #tpu.pipeline_mode<synchronous>, transform_indices = @transform_1, window_bounds = array<i64: 784, 128>}, {pipeline_mode = #tpu.pipeline_mode<synchronous>, transform_indices = @transform_2, window_bounds = array<i64: 1, 128>}, {transform_indices = @transform_3, window_bounds = array<i64: 8, 128>}]} {
    %c0 = arith.constant 0 : index
    %c0_0 = arith.constant 0 : index
    %0 = vector.load %arg1[%c0, %c0_0] : memref<8x784xf32, #tpu.memory_space<vmem>>, vector<8x784xf32>
    %c0_1 = arith.constant 0 : index
    %c0_2 = arith.constant 0 : index
    %1 = vector.load %arg2[%c0_1, %c0_2] : memref<784x128xf32, #tpu.memory_space<vmem>>, vector<784x128xf32>
    %cst = arith.constant dense<0.000000e+00> : vector<8x128xf32>
    %2 = tpu.matmul %0, %1, %cst {dimension_numbers = #tpu.dot_dimension_numbers<[1], [0], [0], [1], [0, 0, 1, 1], [], []>} : vector<8x784xf32>, vector<784x128xf32>, vector<8x128xf32> -> vector<8x128xf32>
    %c0_3 = arith.constant 0 : index
    %c0_4 = arith.constant 0 : index
    %3 = vector.load %arg3[%c0_3, %c0_4] : memref<1x128xf32, #tpu.memory_space<vmem>>, vector<1x128xf32>
    %4 = vector.broadcast %3 : vector<1x128xf32> to vector<8x128xf32>
    %5 = arith.addf %2, %4 : vector<8x128xf32>
    %c0_5 = arith.constant 0 : index
    %c0_6 = arith.constant 0 : index
    %6 = vector.load %arg4[%c0_5, %c0_6] : memref<8x128xf32, #tpu.memory_space<vmem>>, vector<8x128xf32>
    tpu.vector_store %arg4[%c0_5, %c0_6], %5 {strides = array<i32>} : memref<8x128xf32, #tpu.memory_space<vmem>>, vector<8x128xf32>,
    return
  }
  func.func @transform_0(%arg0: i32) -> (i32, i32) {
    %c0_i32 = arith.constant 0 : i32
    %c0_i32_0 = arith.constant 0 : i32
    return %arg0, %c0_i32 : i32, i32
  }
  func.func @transform_1(%arg0: i32) -> (i32, i32) {
    %c0_i32 = arith.constant 0 : i32
    %c0_i32_0 = arith.constant 0 : i32
    %c0_i32_1 = arith.constant 0 : i32
    return %c0_i32, %c0_i32_0 : i32, i32
  }
  func.func @transform_2(%arg0: i32) -> (i32, i32) {
    %c0_i32 = arith.constant 0 : i32
    %c0_i32_0 = arith.constant 0 : i32
    %c0_i32_1 = arith.constant 0 : i32
    return %c0_i32, %c0_i32_0 : i32, i32
  }
  func.func @transform_3(%arg0: i32) -> (i32, i32) {
    %c0_i32 = arith.constant 0 : i32
    %c0_i32_0 = arith.constant 0 : i32
    return %arg0, %c0_i32 : i32, i32
  }
}

</mosaic_0001>

<bundles_post_ra>
// kernel: linear_model_forward.1
= control target key start
LH: loop header
LB: loop body
LE: loop exit
PB: predicated region body
PF: predicated region fallthrough
CT: control target
= control target key end

     0   :  { %8 = vsyncpa [#allocation3], 0  ;;  %v772_v51 = vmov 1983009808   ;;  %v143_v53 = vlaneseq  ;;  %vm774_vm0 = vmmov 0   ;;  %vm213_vm1 = vcmask 130048   ;;  %s1142_s0 = inlined_call_operand.vmem [shape: f32[2,784], index: 0, kind: input, shape index: {}]   ;;  %s1143_s1 = inlined_call_operand.vmem [shape: f32[784,128], index: 1, kind: input, shape index: {}]   ;;  %s1144_s2 = inlined_call_operand.vmem [shape: f32[1,128], index: 2, kind: input, shape index: {}]   ;;  %s1145_s3 = inlined_call_operand.hbm [shape: f32[2,128], index: 3, kind: output, shape index: {}]  }
   0x1   :  { %v39_v0 = vld [vmem:[%s1143_s1 + $0x80] sm:$0xff]  ;;  %v40_v1 = vld [vmem:[%s1143_s1 + $0x88] sm:$0xff]  ;;  %v41_v12 = vld [vmem:[%s1143_s1 + $0x90] sm:$0xff]  ;;  %v141_v52 = vunpack.c.l.s4 %v772_v51 }
   0x2   :  { %v630_v2 = vpack.c.bf16 %v40_v1, %v39_v0  ;;  %v23_v3 = vld [vmem:[%s1143_s1] sm:$0xff]  ;;  %v24_v4 = vld [vmem:[%s1143_s1 + $0x8] sm:$0xff]  ;;  %v42_v13 = vld [vmem:[%s1143_s1 + $0x98] sm:$0xff] }
   0x3   :  { %v71_v5 = vld [vmem:[%s1143_s1 + $0x180] sm:$0xff]  ;;  %v632_v6 = vpack.c.bf16 %v24_v4, %v23_v3  ;;  %v72_v7 = vld [vmem:[%s1143_s1 + $0x188] sm:$0xff]  ;;  %v25_v14 = vld [vmem:[%s1143_s1 + $0x10] sm:$0xff]  ;;  %v634_v15 = vpack.c.bf16 %v42_v13, %v41_v12  ;;  %v144_v3 = vshrl.u32 %v143_v53, 7 }
   0x4   :  { %v55_v8 = vld [vmem:[%s1143_s1 + $0x100] sm:$0xff]  ;;  %v56_v9 = vld [vmem:[%s1143_s1 + $0x108] sm:$0xff]  ;;  %631 = vmatprep.subr.bf16.mxu0 %v630_v2  ;;  %v662_v10 = vpack.c.bf16 %v72_v7, %v71_v5  ;;  %v26_v16 = vld [vmem:[%s1143_s1 + $0x18] sm:$0xff]  ;;  %v142_v2 = vunpack.c.0.s8 %v141_v52 }
   0x5   :  { %v664_v11 = vpack.c.bf16 %v56_v9, %v55_v8  ;;  %633 = vmatpush3.bf16.msra.mxu0 %v632_v6  ;;  %v73_v17 = vld [vmem:[%s1143_s1 + $0x190] sm:$0xff]  ;;  %v74_v18 = vld [vmem:[%s1143_s1 + $0x198] sm:$0xff]  ;;  %v636_v19 = vpack.c.bf16 %v26_v16, %v25_v14  ;;  %v43_v23 = vld [vmem:[%s1143_s1 + $0xa0] sm:$0xff] }
   0x6   :  { %663 = vmatprep.subr.bf16.mxu1 %v662_v10  ;;  %v666_v20 = vpack.c.bf16 %v74_v18, %v73_v17  ;;  %v57_v21 = vld [vmem:[%s1143_s1 + $0x110] sm:$0xff]  ;;  %v58_v22 = vld [vmem:[%s1143_s1 + $0x118] sm:$0xff]  ;;  %635 = vmatprep.subr.bf16.mxu0 %v634_v15  ;;  %v44_v25 = vld [vmem:[%s1143_s1 + $0xa8] sm:$0xff] }
   0x7   :  { %665 = vmatpush3.bf16.msra.mxu1 %v664_v11  ;;  %v668_v24 = vpack.c.bf16 %v58_v22, %v57_v21  ;;  %v27_v26 = vld [vmem:[%s1143_s1 + $0x20] sm:$0xff]  ;;  %v28_v27 = vld [vmem:[%s1143_s1 + $0x28] sm:$0xff]  ;;  %v638_v28 = vpack.c.bf16 %v44_v25, %v43_v23  ;;  %v45_v35 = vld [vmem:[%s1143_s1 + $0xb0] sm:$0xff] }
   0x8   :  { %667 = vmatprep.subr.bf16.mxu1 %v666_v20  ;;  %v75_v29 = vld [vmem:[%s1143_s1 + $0x1a0] sm:$0xff]  ;;  %v76_v30 = vld [vmem:[%s1143_s1 + $0x1a8] sm:$0xff]  ;;  %v640_v32 = vpack.c.bf16 %v28_v27, %v27_v26  ;;  %v46_v36 = vld [vmem:[%s1143_s1 + $0xb8] sm:$0xff]  ;;  %v967_v20 = vsub.s32 %v142_v2, %v144_v3 }
   0x9   :  { %v59_v31 = vld [vmem:[%s1143_s1 + $0x120] sm:$0xff]  ;;  %637 = vmatpush3.bf16.msra.mxu0 %v636_v19  ;;  %v670_v33 = vpack.c.bf16 %v76_v30, %v75_v29  ;;  %v60_v34 = vld [vmem:[%s1143_s1 + $0x128] sm:$0xff]  ;;  %v642_v37 = vpack.c.bf16 %v46_v36, %v45_v35  ;;  %v29_v38 = vld [vmem:[%s1143_s1 + $0x30] sm:$0xff] }
   0xa   :  { %639 = vmatprep.subr.bf16.mxu0 %v638_v28  ;;  %v30_v39 = vld [vmem:[%s1143_s1 + $0x38] sm:$0xff]  ;;  %v77_v40 = vld [vmem:[%s1143_s1 + $0x1b0] sm:$0xff]  ;;  %v672_v41 = vpack.c.bf16 %v60_v34, %v59_v31  ;;  %v47_v46 = vld [vmem:[%s1143_s1 + $0xc0] sm:$0xff] }
   0xb   :  { %669 = vmatpush3.bf16.msra.mxu1 %v668_v24  ;;  %v78_v42 = vld [vmem:[%s1143_s1 + $0x1b8] sm:$0xff]  ;;  %v61_v43 = vld [vmem:[%s1143_s1 + $0x130] sm:$0xff]  ;;  %v48_v47 = vld [vmem:[%s1143_s1 + $0xc8] sm:$0xff]  ;;  %v644_v48 = vpack.c.bf16 %v30_v39, %v29_v38 }
   0xc   :  { %671 = vmatprep.subr.bf16.mxu1 %v670_v33  ;;  %v674_v44 = vpack.c.bf16 %v78_v42, %v77_v40  ;;  %v62_v45 = vld [vmem:[%s1143_s1 + $0x138] sm:$0xff]  ;;  %v79_v49 = vld [vmem:[%s1143_s1 + $0x1c0] sm:$0xff]  ;;  %v80_v50 = vld [vmem:[%s1143_s1 + $0x1c8] sm:$0xff]  ;;  %v646_v54 = vpack.c.bf16 %v48_v47, %v47_v46 }
   0xd   :  { %641 = vmatpush3.bf16.msra.mxu0 %v640_v32  ;;  %v31_v55 = vld [vmem:[%s1143_s1 + $0x40] sm:$0xff]  ;;  %v32_v56 = vld [vmem:[%s1143_s1 + $0x48] sm:$0xff]  ;;  %v676_v57 = vpack.c.bf16 %v62_v45, %v61_v43  ;;  %v49_v58 = vld [vmem:[%s1143_s1 + $0xd0] sm:$0xff]  ;;  %v678_v60 = vpack.c.bf16 %v80_v50, %v79_v49 }
   0xe   :  { %643 = vmatprep.subr.bf16.mxu0 %v642_v37  ;;  %v50_v59 = vld [vmem:[%s1143_s1 + $0xd8] sm:$0xff]  ;;  %v63_v61 = vld [vmem:[%s1143_s1 + $0x140] sm:$0xff]  ;;  %v64_v62 = vld [vmem:[%s1143_s1 + $0x148] sm:$0xff]  ;;  %v648_v63 = vpack.c.bf16 %v32_v56, %v31_v55 }
   0xf   :  { %673 = vmatpush3.bf16.msra.mxu1 %v672_v41  ;;  %v81_v0 = vld [vmem:[%s1143_s1 + $0x1d0] sm:$0xff]  ;;  %v82_v1 = vld [vmem:[%s1143_s1 + $0x1d8] sm:$0xff]  ;;  %v650_v4 = vpack.c.bf16 %v50_v59, %v49_v58  ;;  %v680_v8 = vpack.c.bf16 %v64_v62, %v63_v61  ;;  %v51_v10 = vld [vmem:[%s1143_s1 + $0xe0] sm:$0xff] }
  0x10   :  { %675 = vmatprep.subr.bf16.mxu1 %v674_v44  ;;  %v33_v5 = vld [vmem:[%s1143_s1 + $0x50] sm:$0xff]  ;;  %v34_v6 = vld [vmem:[%s1143_s1 + $0x58] sm:$0xff]  ;;  %v52_v11 = vld [vmem:[%s1143_s1 + $0xe8] sm:$0xff]  ;;  %v682_v12 = vpack.c.bf16 %v82_v1, %v81_v0  ;;  %v773_v1 = vmov 0.0|0.0  }
  0x11   :  { %645 = vmatpush3.bf16.msra.mxu0 %v644_v48  ;;  %v65_v7 = vld [vmem:[%s1143_s1 + $0x150] sm:$0xff]  ;;  %v66_v9 = vld [vmem:[%s1143_s1 + $0x158] sm:$0xff]  ;;  %v35_v13 = vld [vmem:[%s1143_s1 + $0x60] sm:$0xff]  ;;  %v652_v16 = vpack.c.bf16 %v34_v6, %v33_v5  ;;  %v654_v21 = vpack.c.bf16 %v52_v11, %v51_v10 }
  0x12   :  { %647 = vmatprep.subr.bf16.mxu0 %v646_v54  ;;  %v36_v14 = vld [vmem:[%s1143_s1 + $0x68] sm:$0xff]  ;;  %v83_v15 = vld [vmem:[%s1143_s1 + $0x1e0] sm:$0xff]  ;;  %v53_v18 = vld [vmem:[%s1143_s1 + $0xf0] sm:$0xff]  ;;  %v684_v22 = vpack.c.bf16 %v66_v9, %v65_v7 }
  0x13   :  { %677 = vmatpush3.bf16.msra.mxu1 %v676_v57  ;;  %v84_v17 = vld [vmem:[%s1143_s1 + $0x1e8] sm:$0xff]  ;;  %v54_v19 = vld [vmem:[%s1143_s1 + $0xf8] sm:$0xff]  ;;  %v67_v26 = vld [vmem:[%s1143_s1 + $0x160] sm:$0xff]  ;;  %v656_v29 = vpack.c.bf16 %v36_v14, %v35_v13  ;;  %v775_v14 = vmov 0.0  }
  0x14   :  { %679 = vmatprep.subr.bf16.mxu1 %v678_v60  ;;  %v736_v23 = vld [vmem:[%s1142_s0] ss:$14 sps:$4 sm:$0xff]   ;;  %v738_v24 = vld [vmem:[%s1142_s0 + $0x1c] ss:$14 sps:$4 sm:$0xff]   ;;  %v686_v25 = vpack.c.bf16 %v84_v17, %v83_v15  ;;  %v740_v33 = vld [vmem:[%s1142_s0 + $0x4] ss:$14 sps:$4 sm:$0xff]   ;;  %v658_v35 = vpack.c.bf16 %v54_v19, %v53_v18 }
  0x15   :  { %649 = vmatpush3.bf16.msra.mxu0 %v648_v63  ;;  %v68_v27 = vld [vmem:[%s1143_s1 + $0x168] sm:$0xff]  ;;  %v85_v28 = vld [vmem:[%s1143_s1 + $0x1f0] sm:$0xff]  ;;  %v86_v30 = vld [vmem:[%s1143_s1 + $0x1f8] sm:$0xff]  ;;  %v146_v31 = vrot.slane %v736_v23, %v967_v20  ;;  %v160_v32 = vrot.slane %v738_v24, %v967_v20  ;;  %v153_v42 = vrot.slane %v740_v33, %v967_v20 }
  0x16   :  { %651 = vmatprep.subr.bf16.mxu0 %v650_v4  ;;  %v741_v34 = vld [vmem:[%s1142_s0 + $0x20] ss:$14 sps:$4 sm:$0xff]   ;;  %v38_v37 = vld [vmem:[%s1143_s1 + $0x78] sm:$0xff]  ;;  %v688_v38 = vpack.c.bf16 %v68_v27, %v67_v26  ;;  %v690_v44 = vpack.c.bf16 %v86_v30, %v85_v28  ;;  %v745_v5 = vld [vmem:[%s1142_s0 + $0x24] ss:$14 sps:$4 sm:$0xff]  }
  0x17   :  { %681 = vmatpush3.bf16.msra.mxu1 %v680_v8  ;;  %v37_v36 = vld [vmem:[%s1143_s1 + $0x70] sm:$0xff]  ;;  %v169_v39 = vcombine.high %v146_v31, %v160_v32  ;;  %v103_v40 = vld [vmem:[%s1143_s1 + $0x280] sm:$0xff]  ;;  %v104_v41 = vld [vmem:[%s1143_s1 + $0x288] sm:$0xff]  ;;  %v167_v43 = vrot.slane %v741_v34, %v967_v20  ;;  %v168_v55 = vcombine.low %v146_v31, %v160_v32  ;;  %v196_v11 = vrot.slane %v745_v5, %v967_v20 }
  0x18   :  { %683 = vmatprep.subr.bf16.mxu1 %v682_v12  ;;  %v69_v45 = vld [vmem:[%s1143_s1 + $0x170] sm:$0xff]  ;;  %v70_v46 = vld [vmem:[%s1143_s1 + $0x178] sm:$0xff]  ;;  %v660_v47 = vpack.c.bf16 %v38_v37, %v37_v36  ;;  %v694_v49 = vpack.c.bf16 %v104_v41, %v103_v40  ;;  %v87_v50 = vld [vmem:[%s1143_s1 + $0x200] sm:$0xff] }
  0x19   :  { %653 = vmatpush3.bf16.msra.mxu0 %v652_v16  ;;  %280 = vmatprep.mubr.f32.mxu0 %v169_v39  ;;  %v171_v48 = vcombine.high %v153_v42, %v167_v43  ;;  %v88_v51 = vld [vmem:[%s1143_s1 + $0x208] sm:$0xff]  ;;  %v692_v52 = vpack.c.bf16 %v70_v46, %v69_v45  ;;  %v105_v53 = vld [vmem:[%s1143_s1 + $0x290] sm:$0xff]  ;;  %v106_v54 = vld [vmem:[%s1143_s1 + $0x298] sm:$0xff]  ;;  %v170_v57 = vcombine.low %v153_v42, %v167_v43 }
  0x1a   :  { %655 = vmatprep.subr.bf16.mxu0 %v654_v21  ;;  %v696_v56 = vpack.c.bf16 %v88_v51, %v87_v50  ;;  %v698_v58 = vpack.c.bf16 %v106_v54, %v105_v53  ;;  %v89_v59 = vld [vmem:[%s1143_s1 + $0x210] sm:$0xff]  ;;  %v90_v60 = vld [vmem:[%s1143_s1 + $0x218] sm:$0xff]  ;;  %v107_v61 = vld [vmem:[%s1143_s1 + $0x2a0] sm:$0xff] }
  0x1b   :  { %685 = vmatpush3.bf16.msra.mxu1 %v684_v22  ;;  %350 = vmatprep.mubr.f32.mxu1 %v171_v48  ;;  %v108_v62 = vld [vmem:[%s1143_s1 + $0x2a8] sm:$0xff]  ;;  %v91_v63 = vld [vmem:[%s1143_s1 + $0x220] sm:$0xff]  ;;  %v700_v2 = vpack.c.bf16 %v90_v60, %v89_v59  ;;  %v109_v3 = vld [vmem:[%s1143_s1 + $0x2b0] sm:$0xff] }
  0x1c   :  { %687 = vmatprep.subr.bf16.mxu1 %v686_v25  ;;  %v92_v0 = vld [vmem:[%s1143_s1 + $0x228] sm:$0xff]  ;;  %v702_v6 = vpack.c.bf16 %v108_v62, %v107_v61  ;;  %v110_v9 = vld [vmem:[%s1143_s1 + $0x2b8] sm:$0xff]  ;;  %v119_v12 = vld [vmem:[%s1143_s1 + $0x300] sm:$0xff] }
  0x1d   :  { %657 = vmatpush3.bf16.msra.mxu0 %v656_v29  ;;  %v742_v4 = vld [vmem:[%s1142_s0 + $0x8] ss:$14 sps:$4 sm:$0xff]   ;;  %v744_v7 = vld [vmem:[%s1142_s0 + $0xc] ss:$14 sps:$4 sm:$0x33]   ;;  %v704_v18 = vpack.c.bf16 %v92_v0, %v91_v63  ;;  %v706_v21 = vpack.c.bf16 %v110_v9, %v109_v3  ;;  %v95_v28 = vld [vmem:[%s1143_s1 + $0x240] sm:$0xff] }
  0x1e   :  { %659 = vmatprep.subr.bf16.mxu0 %v658_v35  ;;  %v747_v8 = vld [vmem:[%s1142_s0 + $0x28] ss:$14 sps:$4 sm:$0x33]   ;;  %v182_v10 = vrot.slane %v742_v4, %v967_v20  ;;  %v189_v15 = vrot.slane %v744_v7, %v967_v20  ;;  %v94_v23 = vld [vmem:[%s1143_s1 + $0x238] sm:$0xff]  ;;  %v115_v36 = vld [vmem:[%s1143_s1 + $0x2e0] sm:$0xff] }
  0x1f   :  { %689 = vmatpush3.bf16.msra.mxu1 %v688_v38  ;;  %v120_v13 = vld [vmem:[%s1143_s1 + $0x308] sm:$0xff]  ;;  %v203_v16 = vrot.slane %v747_v8, %v967_v20  ;;  %v93_v22 = vld [vmem:[%s1143_s1 + $0x230] sm:$0xff]  ;;  %v111_v20 = vld [vmem:[%s1143_s1 + $0x2c0] sm:$0xff] }
  0x20   :  { %691 = vmatprep.subr.bf16.mxu1 %v690_v44  ;;  %v727_v17 = vpack.c.bf16 %v120_v13, %v119_v12  ;;  %v205_v19 = vcombine.high %v182_v10, %v196_v11  ;;  %v112_v25 = vld [vmem:[%s1143_s1 + $0x2c8] sm:$0xff]  ;;  %v708_v26 = vpack.c.bf16 %v94_v23, %v93_v22  ;;  %v113_v30 = vld [vmem:[%s1143_s1 + $0x2d0] sm:$0xff]  ;;  %v114_v31 = vld [vmem:[%s1143_s1 + $0x2d8] sm:$0xff] }
  0x21   :  { %661 = vmatpush3.bf16.msra.mxu0 %v660_v47  ;;  %v206_v24 = vcombine.low %v189_v15, %v203_v16  ;;  %v710_v27 = vpack.c.bf16 %v112_v25, %v111_v20  ;;  %v96_v29 = vld [vmem:[%s1143_s1 + $0x248] sm:$0xff]  ;;  %v714_v33 = vpack.c.bf16 %v114_v31, %v113_v30  ;;  %v97_v34 = vld [vmem:[%s1143_s1 + $0x250] sm:$0xff]  ;;  %v98_v35 = vld [vmem:[%s1143_s1 + $0x258] sm:$0xff] }
  0x22   :  { %695 = vmatprep.subr.bf16.mxu0 %v694_v49  ;;  %v712_v32 = vpack.c.bf16 %v96_v29, %v95_v28  ;;  %v116_v37 = vld [vmem:[%s1143_s1 + $0x2e8] sm:$0xff]  ;;  %v716_v38 = vpack.c.bf16 %v98_v35, %v97_v34  ;;  %v99_v40 = vld [vmem:[%s1143_s1 + $0x260] sm:$0xff]  ;;  %v117_v42 = vld [vmem:[%s1143_s1 + $0x2f0] sm:$0xff]  ;;  %v204_v49 = vcombine.low %v182_v10, %v196_v11 }
  0x23   :  { %693 = vmatpush3.bf16.msra.mxu1 %v692_v52  ;;  %v718_v39 = vpack.c.bf16 %v116_v37, %v115_v36  ;;  %v100_v41 = vld [vmem:[%s1143_s1 + $0x268] sm:$0xff]  ;;  %v118_v43 = vld [vmem:[%s1143_s1 + $0x2f8] sm:$0xff]  ;;  %v101_v46 = vld [vmem:[%s1143_s1 + $0x270] sm:$0xff] }
  0x24   :  { %281 = vmatmul.mubr.f32.vlgmr.msra.gmra.mrb[0].mxu0 %v168_v55  ;;  %726 = vmatprep.subr.bf16.mxu1 %v773_v1  ;;  %v720_v44 = vpack.c.bf16 %v100_v41, %v99_v40  ;;  %v722_v45 = vpack.c.bf16 %v118_v43, %v117_v42  ;;  %v102_v47 = vld [vmem:[%s1143_s1 + $0x278] sm:$0xff]  ;;  %v513_v51 = vld [vmem:[%s1144_s2] ss:$0 sm:$0xff] }
  0x25   :  { %697 = vmatpush3.bf16.msra.mxu0 %v696_v56  ;;  %420 = vmatprep.mubr.f32.mxu0 %v205_v19  ;;  %v724_v48 = vpack.c.bf16 %v102_v47, %v101_v46 }
  0x26   :  { %351 = vmatmul.mubr.f32.vlgmr.msra.gmra.mrb[0].mxu1 %v170_v57  ;;  %699 = vmatprep.subr.bf16.mxu0 %v698_v58 }
  0x27   :  { %627 = vmatprep.mubr.msk.f32.mxu1 %vm774_vm0, %v775_v14  ;;  %728 = vmatpush3.bf16.msra.mxu1 %v727_v17 }
  0x29   :  { %701 = vmatpush3.bf16.msra.mxu0 %v700_v2 }
  0x2a   :  { %703 = vmatprep.subr.bf16.mxu0 %v702_v6  ;;  %628 = vmatmul.mubr.msk.f32.vlgmr.msra.gmra.mrb[2].mxu1 %vm213_vm1, %v206_v24 }
  0x2d   :  { %705 = vmatpush3.bf16.msra.mxu0 %v704_v18 }
  0x2e   :  { %707 = vmatprep.subr.bf16.mxu0 %v706_v21 }
  0x31   :  { %709 = vmatpush3.bf16.msra.mxu0 %v708_v26 }
  0x32   :  { %711 = vmatprep.subr.bf16.mxu0 %v710_v27 }
  0x35   :  { %713 = vmatpush3.bf16.msra.mxu0 %v712_v32 }
  0x36   :  { %715 = vmatprep.subr.bf16.mxu0 %v714_v33 }
  0x39   :  { %717 = vmatpush3.bf16.msra.mxu0 %v716_v38 }
  0x3a   :  { %719 = vmatprep.subr.bf16.mxu0 %v718_v39 }
  0x3d   :  { %721 = vmatpush3.bf16.msra.mxu0 %v720_v44 }
  0x3e   :  { %723 = vmatprep.subr.bf16.mxu0 %v722_v45 }
  0x41   :  { %725 = vmatpush3.bf16.msra.mxu0 %v724_v48 }
  0x44   :  { %421 = vmatmul.mubr.f32.vlgmr.msra.gmra.mrb[2].mxu0 %v204_v49 }
  0xf7   :  { %v547_v50 = vpop.f32.mrb[0].mxu0 }
  0xf8   :  { %v548_v52 = vpop.f32.mrb[1].mxu0 }
  0xf9   :  { %v549_v53 = vadd.f32 %v548_v52, %v547_v50  ;;  %v582_v54 = vpop.f32.mrb[0].mxu1 }
  0xfa   :  { %v583_v55 = vpop.f32.mrb[1].mxu1 }
  0xfb   :  { %v283_v56 = vadd.f32 %v549_v53, %v513_v51  ;;  %v584_v57 = vadd.f32 %v583_v55, %v582_v54 }
  0xfd   :  { %v353_v58 = vadd.f32 %v584_v57, %v283_v56  ;;  %v492_v59 = vpop.f32.mrb[2].mxu1 }
  0xfe   :  { %v629_v60 = vpop.f32.mrb[3].mxu1 }
 0x117   :  { %v617_v61 = vpop.f32.mrb[2].mxu0 }
 0x118   :  { %v618_v62 = vpop.f32.mrb[3].mxu0 }
 0x119   :  { %v619_v63 = vadd.f32 %v618_v62, %v617_v61 }
 0x11b   :  { %v423_v0 = vadd.f32 %v619_v63, %v353_v58 }
 0x11d   :  { %v493_v1 = vadd.f32 %v492_v59, %v423_v0 }
 0x11f   :  { %496 = vst [vmem:[#allocation2] sm:$0xff] %v493_v1 }
 0x120   :  { %501 = vsyncadd [#allocation3], 96  ;;  %s776_s1 = smov [#allocation2]  }
 0x121   :  { %s502_s8 = sshll.u32 %s776_s1, 4  ;;  %s503_s8 = int_to_ptr.vmem [resolvable:$true] %s502_s8 }
 0x122   :  { %s748_s2 = scalar_lea.vmem %s503_s8, 32  ;;  %s752_s9 = scalar_lea.vmem %s503_s8, 128 }
 0x123   :  { %p749_p0 = scmp.ne.s32.totalorder %s503_s8, %s748_s2  ;;  %p753_p1 = scmp.lt.s32.totalorder %s503_s8, %s503_s8 }
 0x124   :  { %p754_p2 = scmp.lt.s32.totalorder %s752_s9, %s748_s2 }
 0x126   :  { %p755_p3 = por %p754_p2, %p753_p1 }
 0x128   :  { %p756_p4 = pnand %p755_p3, %p749_p0 }
 0x12a   :  { %759 = shalt.err (!%p756_p4)
}
 0x12b   :  { %s760_s12 = scalar_lea.hbm %s1145_s3, 32 }
 0x12c   :  { %p761_p5 = scmp.ne.s32.totalorder %s1145_s3, %s760_s12  ;;  %p764_p6 = scmp.lt.u32.totalorder %s760_s12, %s1145_s3 }
 0x12e   :  { %p766_p7 = pnand %p764_p6, %p761_p5 }
 0x130   :  { %769 = shalt.err (!%p766_p7)
}
 0x131   :  { %s777_s17 = smov 32   ;;  %s778_s18 = smov 2  }
 0x132   :  { %508 = dma.vmem_to_hbm [thread:$0]  %s503_s8, 32, %s1145_s3, [#allocation3], %s777_s17, %s777_s17, %s778_s18  }
 0x133   :  { %770 = dma.done.wait [#allocation3], 128  }
 0x134   :  { %771 = vsyncadd [#allocation3], 4294967168 }
 0x135   :  { %512 = vsyncpa [#allocation3], 1 }

</bundles_post_ra>
